<compile_context>
chip_gen: v7x
topology: tpu7x:2x2x1
jax: 0.10.0
libtpu: 0.0.40
codegen_flags: <defaults>
</compile_context>

<pallas_src>
import jax
import jax.numpy as jnp
from jax import lax
from jax.experimental import pallas as pl
from jax.experimental.pallas import tpu as pltpu


def _conv_shuffle_kernel(x_ref, w_ref, b_ref, o_ref):
    """Fused conv + pixel-shuffle as one MXU matmul.

    x_ref : (N*Ho, K*Wp*C)     K shifted row windows concatenated along contraction
    w_ref : (K*Wp*C, Wo*Cout)  Toeplitz weights, columns ordered (rh, w, rw, c)
    b_ref : (1, Wo*Cout)       bias broadcast over rows
    o_ref : (N*Ho, Wo*Cout)    pixel-shuffled output (lane-dense, 256 = 2 lane tiles)
    """
    acc = jnp.dot(x_ref[...], w_ref[...], preferred_element_type=jnp.float32)
    o_ref[...] = (acc + b_ref[...]).astype(o_ref.dtype)


def _shuffle_permuted_weights(w_oihw, r):
    """OIHW -> HWIO with output channels reordered (c, rh, rw) -> (rh, rw, c)."""
    Cout, Cin, K, _ = w_oihw.shape
    C = Cout // (r * r)
    w = jnp.transpose(w_oihw, (2, 3, 1, 0))                 # (K, K, Cin, Cout)
    w = w.reshape(K, K, Cin, C, r, r)                       # (..., c, rh, rw)
    w = jnp.transpose(w, (0, 1, 2, 4, 5, 3))                # (..., rh, rw, c)
    return w.reshape(K, K, Cin, Cout)


def _toeplitz_weights(w_perm, Wo, Wp, r):
    """(K, K, C, Cout) -> (K, Wp*C, Wo*Cout) row-Toeplitz, columns ordered (rh, w, rw, c).

    w_toep[kh, wp*C + ci, col(rh,w,rw,c)] = w_perm[kh, wp - w, ci, (rh,rw,c)] for
    0 <= wp - w < K, else 0.
    """
    K, _, C, Cout = w_perm.shape
    mats = []
    for kh in range(K):
        a = w_perm[kh].reshape(K * C, Cout)                          # (K*C, Cout)
        a = jnp.broadcast_to(a[None], (Wo, K * C, Cout))             # one copy per w
        a = jnp.pad(a, ((0, 0), (0, (Wp + 1 - K) * C), (0, 0)))      # (Wo, (Wp+1)*C, Cout)
        # "shift row w right by w*C" trick: flatten rows of width (Wp+1)*C, truncate.
        a = a.reshape(Wo * (Wp + 1) * C, Cout)[: Wo * Wp * C]
        a = a.reshape(Wo, Wp * C, Cout)
        a = jnp.transpose(a, (1, 0, 2))                              # (Wp*C, Wo, Cout)
        a = a.reshape(Wp * C, Wo, r, Cout // r)                      # cols (w, rh, rw*C+c)
        a = jnp.transpose(a, (0, 2, 1, 3))                           # cols (rh, w, rw*C+c)
        mats.append(a.reshape(Wp * C, Wo * Cout))
    return jnp.stack(mats, axis=0)                                   # (K, Wp*C, Wo*Cout)


def _shuffle_bias_row(bias, Wo, r):
    """Bias laid out to match the (rh, w, rw, c) column order of the kernel output."""
    Cout = bias.shape[0]
    C = Cout // (r * r)
    b = bias.reshape(C, r, r)
    b = jnp.transpose(b, (1, 2, 0)).reshape(r, r * C)                # (rh, rw*C + c)
    b = jnp.broadcast_to(b[:, None, :], (r, Wo, r * C))              # (rh, w, rw*C + c)
    return b.reshape(1, Wo * Cout)


def make_pixel_shuffle_block(w_oihw, bias, img_hw, *, pad, scale=2):
    """Build a jitted forward for PixelShuffleBlock.

    The PixelShuffle permutation is folded into the conv weights and the conv is
    expressed as one row-Toeplitz matmul. All weight prep is done ONCE here (module
    init); the returned callable only does fused layout glue + one pallas_call.
    """
    Cout, C, K, _ = w_oihw.shape
    r = scale
    assert Cout == C * r * r
    H, W = img_hw
    Ho = H + 2 * pad - K + 1
    Wo = W + 2 * pad - K + 1
    Hp, Wp = H + 2 * pad, W + 2 * pad

    # --- one-time weight prep: fold PixelShuffle + build flattened Toeplitz RHS ---
    w_perm = _shuffle_permuted_weights(jnp.asarray(w_oihw, jnp.float32), r)
    w_toep = _toeplitz_weights(w_perm, Wo, Wp, r)                     # (K, Wp*C, Wo*Cout)
    w_flat = w_toep.reshape(K * Wp * C, Wo * Cout)                    # single-matmul RHS
    b_row = _shuffle_bias_row(jnp.asarray(bias, jnp.float32), Wo, r)  # (1, Wo*Cout)
    w_flat = jax.block_until_ready(w_flat)
    b_row = jax.block_until_ready(b_row)

    @jax.jit
    def forward(x_nchw):
        N = x_nchw.shape[0]
        # Layout glue (fused by XLA under this jit): NCHW -> NHWC, pad, flatten
        # (W, C) into the lane dim, concat the K shifted row windows along the
        # contraction dim, fold batch into the matmul M dim.
        x_nhwc = jnp.transpose(x_nchw, (0, 2, 3, 1))
        xp = jnp.pad(x_nhwc, ((0, 0), (pad, pad), (pad, pad), (0, 0)))
        xp = xp.reshape(N, Hp, Wp * C)
        x_lhs = jnp.concatenate([xp[:, kh:kh + Ho, :] for kh in range(K)], axis=-1)
        x_lhs = x_lhs.reshape(N * Ho, K * Wp * C)

        out_flat = pl.pallas_call(
            _conv_shuffle_kernel,
            out_shape=jax.ShapeDtypeStruct((N * Ho, Wo * Cout), x_nchw.dtype),
            in_specs=[
                pl.BlockSpec(memory_space=pltpu.MemorySpace.VMEM),
                pl.BlockSpec(memory_space=pltpu.MemorySpace.VMEM),
                pl.BlockSpec(memory_space=pltpu.MemorySpace.VMEM),
            ],
            out_specs=pl.BlockSpec(memory_space=pltpu.MemorySpace.VMEM),
        )(x_lhs, w_flat, b_row)

        # Column order (rh, w, rw, c) + row order (n, h) means the shuffled NHWC
        # output is a pure (bitwise) reshape of the kernel output; only the PyTorch
        # NCHW convention still requires one transpose (fused under this jit).
        out_nhwc = out_flat.reshape(N, Ho * r, Wo * r, C)
        return jnp.transpose(out_nhwc, (0, 3, 1, 2))

    return forward


if __name__ == "__main__":
    # Module hyper-params: nn.Conv2d(channel, channel*4, kernel, padding=pad) + PixelShuffle(2).
    channel, kernel_size, pad = 4, 3, 1
    scale = 2
    Cout = channel * scale ** 2

    key = jax.random.PRNGKey(0)
    kx, kw, kb = jax.random.split(key, 3)

    # Deterministic synthetic params, PyTorch-style uniform init bounds, OIHW layout.
    fan_in = channel * kernel_size * kernel_size
    bound = 1.0 / (fan_in ** 0.5)
    w_oihw = jax.random.uniform(kw, (Cout, channel, kernel_size, kernel_size),
                                jnp.float32, -bound, bound)
    bias = jax.random.uniform(kb, (Cout,), jnp.float32, -bound, bound)

    # Input (PyTorch NCHW convention): batch=2, channels=4, spatial=16x16.
    x = jax.random.normal(kx, (2, channel, 16, 16), jnp.float32)

    forward = make_pixel_shuffle_block(w_oihw, bias, (16, 16), pad=pad, scale=scale)
    out = jax.block_until_ready(forward(x))
    assert out.shape == (2, channel, 32, 32), out.shape

    # Silent correctness check: XLA conv + PyTorch-order PixelShuffle reference.
    ref_conv = lax.conv_general_dilated(
        jnp.transpose(x, (0, 2, 3, 1)), jnp.transpose(w_oihw, (2, 3, 1, 0)),
        window_strides=(1, 1), padding=[(pad, pad), (pad, pad)],
        dimension_numbers=("NHWC", "HWIO", "NHWC")) + bias
    ref_nchw = jnp.transpose(ref_conv, (0, 3, 1, 2))          # (N, Cout, Ho, Wo)
    Nb, _, Ho_, Wo_ = ref_nchw.shape
    ref = ref_nchw.reshape(Nb, channel, scale, scale, Ho_, Wo_)
    ref = jnp.transpose(ref, (0, 1, 4, 2, 5, 3)).reshape(
        Nb, channel, Ho_ * scale, Wo_ * scale)
    assert jnp.allclose(out, ref, atol=1e-4, rtol=1e-4)

    print("KERNEL_OK")
</pallas_src>

<mosaic_0001>
module attributes {stable_mosaic.version = 11 : i64} {
  func.func @_conv_shuffle_kernel(%arg0: memref<32x216xf32, #tpu.memory_space<vmem>>, %arg1: memref<216x256xf32, #tpu.memory_space<vmem>>, %arg2: memref<1x256xf32, #tpu.memory_space<vmem>>, %arg3: memref<32x256xf32, #tpu.memory_space<vmem>>) attributes {dimension_semantics = [], scalar_prefetch = 0 : i64, scratch_operands = 0 : i64, tpu.core_type = #tpu.core_type<tc>} {
    %c0 = arith.constant 0 : index
    %c0_0 = arith.constant 0 : index
    %0 = vector.load %arg0[%c0, %c0_0] : memref<32x216xf32, #tpu.memory_space<vmem>>, vector<32x216xf32>
    %c0_1 = arith.constant 0 : index
    %c0_2 = arith.constant 0 : index
    %1 = vector.load %arg1[%c0_1, %c0_2] : memref<216x256xf32, #tpu.memory_space<vmem>>, vector<216x256xf32>
    %cst = arith.constant dense<0.000000e+00> : vector<32x256xf32>
    %2 = tpu.matmul %0, %1, %cst {dimension_numbers = #tpu.dot_dimension_numbers<[1], [0], [0], [1], [0, 0, 1, 1], [], []>} : vector<32x216xf32>, vector<216x256xf32>, vector<32x256xf32> -> vector<32x256xf32>
    %c0_3 = arith.constant 0 : index
    %c0_4 = arith.constant 0 : index
    %3 = vector.load %arg2[%c0_3, %c0_4] : memref<1x256xf32, #tpu.memory_space<vmem>>, vector<1x256xf32>
    %4 = vector.broadcast %3 : vector<1x256xf32> to vector<32x256xf32>
    %5 = arith.addf %2, %4 : vector<32x256xf32>
    %c0_5 = arith.constant 0 : index
    %c0_6 = arith.constant 0 : index
    %6 = vector.load %arg3[%c0_5, %c0_6] : memref<32x256xf32, #tpu.memory_space<vmem>>, vector<32x256xf32>
    tpu.vector_store %arg3[%c0_5, %c0_6], %5 {strides = array<i32>} : memref<32x256xf32, #tpu.memory_space<vmem>>, vector<32x256xf32>,
    return
  }
}

</mosaic_0001>

<bundles_post_ra>
// kernel: forward.1
= control target key start
LH: loop header
LB: loop body
LE: loop exit
PB: predicated region body
PF: predicated region fallthrough
CT: control target
= control target key end

     0   :  { %vm88_vm0 = vcmask 719872   ;;  %s523_s1 = inlined_call_operand.vmem [shape: f32[216,256], index: 1, kind: input, shape index: {}]   ;;  %s524_s0 = inlined_call_operand.vmem [shape: f32[32,216], index: 0, kind: input, shape index: {}]   ;;  %s525_s2 = inlined_call_operand.vmem [shape: f32[1,256], index: 2, kind: input, shape index: {}]   ;;  %s526_s3 = inlined_call_operand.vmem [shape: f32[32,256], index: 3, kind: output, shape index: {}]  }
   0x1   :  { %v23_v0 = vld [vmem:[%s523_s1 + $0x8] sm:$0xff]  ;;  %v25_v1 = vld [vmem:[%s523_s1 + $0x18] sm:$0xff]  ;;  %v22_v2 = vld [vmem:[%s523_s1] sm:$0xff] }
   0x2   :  { %v206_v3 = vpack.c.bf16 %v25_v1, %v23_v0  ;;  %v24_v4 = vld [vmem:[%s523_s1 + $0x10] sm:$0xff]  ;;  %v27_v5 = vld [vmem:[%s523_s1 + $0x28] sm:$0xff]  ;;  %v29_v6 = vld [vmem:[%s523_s1 + $0x38] sm:$0xff] }
   0x3   :  { %v208_v7 = vpack.c.bf16 %v24_v4, %v22_v2  ;;  %v210_v8 = vpack.c.bf16 %v29_v6, %v27_v5  ;;  %v26_v9 = vld [vmem:[%s523_s1 + $0x20] sm:$0xff]  ;;  %v28_v10 = vld [vmem:[%s523_s1 + $0x30] sm:$0xff]  ;;  %v31_v11 = vld [vmem:[%s523_s1 + $0x48] sm:$0xff] }
   0x4   :  { %207 = vmatprep.subr.bf16.mxu0 %v206_v3  ;;  %258 = vmatprep.subr.bf16.mxu1 %v206_v3  ;;  %v33_v12 = vld [vmem:[%s523_s1 + $0x58] sm:$0xff]  ;;  %v212_v13 = vpack.c.bf16 %v28_v10, %v26_v9  ;;  %v30_v15 = vld [vmem:[%s523_s1 + $0x40] sm:$0xff]  ;;  %v32_v16 = vld [vmem:[%s523_s1 + $0x50] sm:$0xff] }
   0x5   :  { %209 = vmatpush1.bf16.msra.mxu0 %v208_v7  ;;  %272 = vmatpush1.bf16.msra.mxu1 %v208_v7  ;;  %v214_v14 = vpack.c.bf16 %v33_v12, %v31_v11  ;;  %v35_v17 = vld [vmem:[%s523_s1 + $0x68] sm:$0xff]  ;;  %v37_v18 = vld [vmem:[%s523_s1 + $0x78] sm:$0xff]  ;;  %v216_v19 = vpack.c.bf16 %v32_v16, %v30_v15  ;;  %v34_v21 = vld [vmem:[%s523_s1 + $0x60] sm:$0xff] }
   0x6   :  { %211 = vmatprep.subr.bf16.mxu0 %v210_v8  ;;  %259 = vmatprep.subr.bf16.mxu1 %v210_v8  ;;  %v218_v20 = vpack.c.bf16 %v37_v18, %v35_v17  ;;  %v36_v22 = vld [vmem:[%s523_s1 + $0x70] sm:$0xff]  ;;  %v39_v23 = vld [vmem:[%s523_s1 + $0x88] sm:$0xff]  ;;  %v41_v24 = vld [vmem:[%s523_s1 + $0x98] sm:$0xff] }
   0x7   :  { %v220_v25 = vpack.c.bf16 %v36_v22, %v34_v21  ;;  %v222_v26 = vpack.c.bf16 %v41_v24, %v39_v23  ;;  %v38_v27 = vld [vmem:[%s523_s1 + $0x80] sm:$0xff]  ;;  %v40_v28 = vld [vmem:[%s523_s1 + $0x90] sm:$0xff]  ;;  %v43_v29 = vld [vmem:[%s523_s1 + $0xa8] sm:$0xff]  ;;  %v78_v24 = vlaneseq }
   0x8   :  { %v45_v30 = vld [vmem:[%s523_s1 + $0xb8] sm:$0xff]  ;;  %v224_v31 = vpack.c.bf16 %v40_v28, %v38_v27  ;;  %v42_v33 = vld [vmem:[%s523_s1 + $0xa0] sm:$0xff]  ;;  %v44_v34 = vld [vmem:[%s523_s1 + $0xb0] sm:$0xff] }
   0x9   :  { %213 = vmatpush1.bf16.msra.mxu0 %v212_v13  ;;  %273 = vmatpush1.bf16.msra.mxu1 %v212_v13  ;;  %v226_v32 = vpack.c.bf16 %v45_v30, %v43_v29  ;;  %v47_v35 = vld [vmem:[%s523_s1 + $0xc8] sm:$0xff]  ;;  %v49_v36 = vld [vmem:[%s523_s1 + $0xd8] sm:$0xff]  ;;  %v228_v39 = vpack.c.bf16 %v44_v34, %v42_v33  ;;  %v46_v41 = vld [vmem:[%s523_s1 + $0xc0] sm:$0xff] }
   0xa   :  { %215 = vmatprep.subr.bf16.mxu0 %v214_v14  ;;  %260 = vmatprep.subr.bf16.mxu1 %v214_v14  ;;  %v15_v37 = vld [vmem:[%s524_s0 + $0x8] sm:$0xff]  ;;  %v230_v40 = vpack.c.bf16 %v49_v36, %v47_v35  ;;  %v48_v42 = vld [vmem:[%s523_s1 + $0xd0] sm:$0xff]  ;;  %v53_v44 = vld [vmem:[%s523_s1 + $0xf8] sm:$0xff] }
   0xb   :  { %v19_v38 = vld [vmem:[%s524_s0 + $0x28] sm:$0xff]  ;;  %202 = vmatprep.mubr.msk.f32.mxu0 %vm88_vm0, %v15_v37  ;;  %v232_v45 = vpack.c.bf16 %v48_v42, %v46_v41  ;;  %v50_v47 = vld [vmem:[%s523_s1 + $0xe0] sm:$0xff]  ;;  %v52_v48 = vld [vmem:[%s523_s1 + $0xf0] sm:$0xff] }
   0xc   :  { %204 = vmatprep.mubr.msk.f32.mxu1 %vm88_vm0, %v19_v38  ;;  %v51_v43 = vld [vmem:[%s523_s1 + $0xe8] sm:$0xff]  ;;  %v57_v50 = vld [vmem:[%s523_s1 + $0x118] sm:$0xff]  ;;  %v236_v51 = vpack.c.bf16 %v52_v48, %v50_v47  ;;  %v54_v53 = vld [vmem:[%s523_s1 + $0x100] sm:$0xff] }
   0xd   :  { %217 = vmatpush1.bf16.msra.mxu0 %v216_v19  ;;  %274 = vmatpush1.bf16.msra.mxu1 %v216_v19  ;;  %v234_v46 = vpack.c.bf16 %v53_v44, %v51_v43  ;;  %v55_v49 = vld [vmem:[%s523_s1 + $0x108] sm:$0xff]  ;;  %v56_v54 = vld [vmem:[%s523_s1 + $0x110] sm:$0xff]  ;;  %v61_v56 = vld [vmem:[%s523_s1 + $0x138] sm:$0xff] }
   0xe   :  { %219 = vmatprep.subr.bf16.mxu0 %v218_v20  ;;  %261 = vmatprep.subr.bf16.mxu1 %v218_v20  ;;  %v238_v52 = vpack.c.bf16 %v57_v50, %v55_v49  ;;  %v59_v55 = vld [vmem:[%s523_s1 + $0x128] sm:$0xff]  ;;  %v240_v57 = vpack.c.bf16 %v56_v54, %v54_v53  ;;  %v58_v59 = vld [vmem:[%s523_s1 + $0x120] sm:$0xff]  ;;  %v60_v60 = vld [vmem:[%s523_s1 + $0x130] sm:$0xff] }
   0xf   :  { %v242_v58 = vpack.c.bf16 %v61_v56, %v59_v55  ;;  %v63_v61 = vld [vmem:[%s523_s1 + $0x148] sm:$0xff]  ;;  %v65_v62 = vld [vmem:[%s523_s1 + $0x158] sm:$0xff]  ;;  %v244_v63 = vpack.c.bf16 %v60_v60, %v58_v59  ;;  %v62_v1 = vld [vmem:[%s523_s1 + $0x140] sm:$0xff] }
  0x10   :  { %v246_v0 = vpack.c.bf16 %v65_v62, %v63_v61  ;;  %v64_v2 = vld [vmem:[%s523_s1 + $0x150] sm:$0xff]  ;;  %v67_v3 = vld [vmem:[%s523_s1 + $0x168] sm:$0xff]  ;;  %v69_v4 = vld [vmem:[%s523_s1 + $0x178] sm:$0xff] }
  0x11   :  { %221 = vmatpush1.bf16.msra.mxu0 %v220_v25  ;;  %275 = vmatpush1.bf16.msra.mxu1 %v220_v25  ;;  %v248_v5 = vpack.c.bf16 %v64_v2, %v62_v1  ;;  %v250_v6 = vpack.c.bf16 %v69_v4, %v67_v3  ;;  %v66_v7 = vld [vmem:[%s523_s1 + $0x160] sm:$0xff]  ;;  %v68_v8 = vld [vmem:[%s523_s1 + $0x170] sm:$0xff]  ;;  %v71_v9 = vld [vmem:[%s523_s1 + $0x188] sm:$0xff]  ;;  %v79_v25 = vshrl.u32 %v78_v24, 7 }
  0x12   :  { %223 = vmatprep.subr.bf16.mxu0 %v222_v26  ;;  %262 = vmatprep.subr.bf16.mxu1 %v222_v26  ;;  %v73_v10 = vld [vmem:[%s523_s1 + $0x198] sm:$0xff]  ;;  %v252_v11 = vpack.c.bf16 %v68_v8, %v66_v7  ;;  %v70_v13 = vld [vmem:[%s523_s1 + $0x180] sm:$0xff]  ;;  %v72_v14 = vld [vmem:[%s523_s1 + $0x190] sm:$0xff] }
  0x13   :  { %v254_v12 = vpack.c.bf16 %v73_v10, %v71_v9  ;;  %v256_v15 = vpack.c.bf16 %v72_v14, %v70_v13  ;;  %v75_v16 = vld [vmem:[%s523_s1 + $0x1a8] sm:$0xff]  ;;  %v74_v17 = vld [vmem:[%s523_s1 + $0x1a0] sm:$0xff]  ;;  %v17_v20 = vld [vmem:[%s524_s0 + $0x18] sm:$0xff]  ;;  %v80_v26 = vsub.s32 0, %v79_v25  ;;  %v84_v28 = vsub.s32 1, %v79_v25 }
  0x14   :  { %v14_v18 = vld [vmem:[%s524_s0] sm:$0xff]  ;;  %v21_v21 = vld [vmem:[%s524_s0 + $0x38] sm:$0xff]  ;;  %v16_v22 = vld [vmem:[%s524_s0 + $0x10] sm:$0xff] }
  0x15   :  { %225 = vmatpush1.bf16.msra.mxu0 %v224_v31  ;;  %276 = vmatpush1.bf16.msra.mxu1 %v224_v31  ;;  %v18_v19 = vld [vmem:[%s524_s0 + $0x20] sm:$0xff]  ;;  %v20_v23 = vld [vmem:[%s524_s0 + $0x30] sm:$0xff] }
  0x16   :  { %227 = vmatprep.subr.bf16.mxu0 %v226_v32  ;;  %263 = vmatprep.subr.bf16.mxu1 %v226_v32  ;;  %v76_v27 = vld [vmem:[%s525_s2] sm:$0x3] }
  0x17   :  { %v81_v29 = vrot.slane %v76_v27, %v80_v26  ;;  %v85_v30 = vrot.slane %v76_v27, %v84_v28 }
  0x19   :  { %229 = vmatpush1.bf16.msra.mxu0 %v228_v39  ;;  %277 = vmatpush1.bf16.msra.mxu1 %v228_v39 }
  0x1a   :  { %231 = vmatprep.subr.bf16.mxu0 %v230_v40  ;;  %264 = vmatprep.subr.bf16.mxu1 %v230_v40 }
  0x1d   :  { %233 = vmatpush1.bf16.msra.mxu0 %v232_v45  ;;  %278 = vmatpush1.bf16.msra.mxu1 %v232_v45 }
  0x1e   :  { %235 = vmatprep.subr.bf16.mxu0 %v234_v46  ;;  %265 = vmatprep.subr.bf16.mxu1 %v234_v46 }
  0x21   :  { %237 = vmatpush1.bf16.msra.mxu0 %v236_v51  ;;  %279 = vmatpush1.bf16.msra.mxu1 %v236_v51 }
  0x22   :  { %239 = vmatprep.subr.bf16.mxu0 %v238_v52  ;;  %266 = vmatprep.subr.bf16.mxu1 %v238_v52 }
  0x25   :  { %241 = vmatpush1.bf16.msra.mxu0 %v240_v57  ;;  %280 = vmatpush1.bf16.msra.mxu1 %v240_v57 }
  0x26   :  { %243 = vmatprep.subr.bf16.mxu0 %v242_v58  ;;  %267 = vmatprep.subr.bf16.mxu1 %v242_v58 }
  0x29   :  { %245 = vmatpush1.bf16.msra.mxu0 %v244_v63  ;;  %281 = vmatpush1.bf16.msra.mxu1 %v244_v63 }
  0x2a   :  { %247 = vmatprep.subr.bf16.mxu0 %v246_v0  ;;  %268 = vmatprep.subr.bf16.mxu1 %v246_v0 }
  0x2d   :  { %249 = vmatpush1.bf16.msra.mxu0 %v248_v5  ;;  %282 = vmatpush1.bf16.msra.mxu1 %v248_v5 }
  0x2e   :  { %251 = vmatprep.subr.bf16.mxu0 %v250_v6  ;;  %269 = vmatprep.subr.bf16.mxu1 %v250_v6 }
  0x31   :  { %253 = vmatpush1.bf16.msra.mxu0 %v252_v11  ;;  %283 = vmatpush1.bf16.msra.mxu1 %v252_v11 }
  0x32   :  { %255 = vmatprep.subr.bf16.mxu0 %v254_v12  ;;  %270 = vmatprep.subr.bf16.mxu1 %v254_v12 }
  0x35   :  { %257 = vmatpush1.bf16.msra.mxu0 %v256_v15  ;;  %284 = vmatpush1.bf16.msra.mxu1 %v256_v15 }
  0x36   :  { %153 = vmatprep.subr.mxu0 %v75_v16  ;;  %271 = vmatprep.subr.mxu1 %v75_v16 }
  0x39   :  { %154 = vmatpush1.msra.mxu0 %v74_v17  ;;  %285 = vmatpush1.msra.mxu1 %v74_v17 }
  0x3a   :  { %166 = vmatmul.mubr.f32.vlgmr.msra.gmra.mrb[0].mxu0 %v14_v18  ;;  %178 = vmatmul.mubr.f32.vlgmr.msra.gmra.mrb[0].mxu1 %v18_v19 }
  0x3b   :  { %203 = vmatprep.mubr.msk.f32.mxu0 %vm88_vm0, %v17_v20  ;;  %205 = vmatprep.mubr.msk.f32.mxu1 %vm88_vm0, %v21_v21 }
  0x3e   :  { %172 = vmatmul.mubr.f32.gmra.mrb[2].mxu0 %v16_v22  ;;  %184 = vmatmul.mubr.f32.gmra.mrb[2].mxu1 %v20_v23 }
 0x10d   :  { %v167_v31 = vpop.f32.mrb[0].mxu0  ;;  %v179_v32 = vpop.f32.mrb[0].mxu1 }
 0x10e   :  { %v168_v33 = vadd.f32 %v167_v31, %v81_v29  ;;  %v180_v34 = vadd.f32 %v179_v32, %v81_v29  ;;  %v169_v35 = vpop.f32.mrb[1].mxu0  ;;  %v181_v36 = vpop.f32.mrb[1].mxu1 }
 0x10f   :  { %v170_v37 = vadd.f32 %v169_v35, %v85_v30  ;;  %v182_v38 = vadd.f32 %v181_v36, %v85_v30 }
 0x110   :  { %190 = vst [vmem:[%s526_s3] sm:$0xff] %v168_v33  ;;  %194 = vst [vmem:[%s526_s3 + $0x20] sm:$0xff] %v180_v34 }
 0x111   :  { %191 = vst [vmem:[%s526_s3 + $0x8] sm:$0xff] %v170_v37  ;;  %195 = vst [vmem:[%s526_s3 + $0x28] sm:$0xff] %v182_v38  ;;  %v173_v39 = vpop.f32.mrb[2].mxu0  ;;  %v185_v40 = vpop.f32.mrb[2].mxu1 }
 0x112   :  { %v174_v41 = vadd.f32 %v173_v39, %v81_v29  ;;  %v186_v42 = vadd.f32 %v185_v40, %v81_v29  ;;  %v175_v43 = vpop.f32.mrb[3].mxu0  ;;  %v187_v44 = vpop.f32.mrb[3].mxu1 }
 0x113   :  { %v176_v45 = vadd.f32 %v175_v43, %v85_v30  ;;  %v188_v46 = vadd.f32 %v187_v44, %v85_v30 }
 0x114   :  { %192 = vst [vmem:[%s526_s3 + $0x10] sm:$0xff] %v174_v41  ;;  %196 = vst [vmem:[%s526_s3 + $0x30] sm:$0xff] %v186_v42 }
 0x115   :  { %193 = vst [vmem:[%s526_s3 + $0x18] sm:$0xff] %v176_v45  ;;  %197 = vst [vmem:[%s526_s3 + $0x38] sm:$0xff] %v188_v46 }

</bundles_post_ra>
